<compile_context>
chip_gen: v7x
topology: tpu7x:2x2x1
jax: 0.10.0
libtpu: 0.0.40
codegen_flags: <defaults>
</compile_context>

<pallas_src>
import jax
import jax.numpy as jnp
from jax.experimental import pallas as pl
from jax.experimental.pallas import tpu as pltpu


def _stft_loss_kernel(x_ref, rhs_hbm, out_ref, rhs_vmem, dma_sem, acc_ref):
    """One row-tile: fused pred|targ windowed-DFT matmul, magnitudes, loss sums.

    x_ref    : (2, tm, n_fft) bf16   -- [pred tile ; targ tile]
    rhs_hbm  : (n_fft, n_fft+128) bf16 in HBM (window folded in, Nyquist col)
    out_ref  : (1, 128) f32          -- lanes 0/1/2 = ssd / sst / slog
    rhs_vmem : VMEM scratch, same shape as rhs_hbm (resident, copied once)
    dma_sem  : DMA semaphore for the one-time RHS copy
    acc_ref  : SMEM (4,) f32 scalar accumulators
    """
    step = pl.program_id(0)

    @pl.when(step == 0)
    def _init():
        cp = pltpu.make_async_copy(rhs_hbm, rhs_vmem, dma_sem)
        cp.start()
        cp.wait()
        acc_ref[0] = jnp.float32(0.0)
        acc_ref[1] = jnp.float32(0.0)
        acc_ref[2] = jnp.float32(0.0)

    two, tm, n_fft = x_ref.shape
    f = n_fft // 2

    # Layout-free collapse (2, tm, n_fft) -> (2*tm, n_fft): one RHS-stationary
    # MXU pass covers both pred and targ rows (halves weight pushes / drains).
    x = x_ref[...].reshape(two * tm, n_fft)
    out = jnp.dot(x, rhs_vmem[...], preferred_element_type=jnp.float32)

    p_out = out[:tm]
    t_out = out[tm:]

    def _mags(o):
        re = o[:, :f]
        im = o[:, f:2 * f]
        main = jnp.sqrt(re * re + im * im)       # bins 0 .. n_fft/2 - 1
        nyq = jnp.abs(o[:, 2 * f:])              # lane 0 = Nyquist bin, rest 0
        return main, nyq

    p_mag, p_nyq = _mags(p_out)
    t_mag, t_nyq = _mags(t_out)

    dm = t_mag - p_mag
    dn = t_nyq - p_nyq
    ssd = jnp.sum(dm * dm) + jnp.sum(dn * dn)            # ||T - P||_F^2 partial
    sst = jnp.sum(t_mag * t_mag) + jnp.sum(t_nyq * t_nyq)  # ||T||_F^2 partial

    eps = jnp.float32(1e-7)

    def _log_l1(p, t):
        p_c = jnp.maximum(p, eps)
        t_c = jnp.maximum(t, eps)
        # One log + one approx reciprocal instead of two logs (EUP relief);
        # the exact-equality guard keeps padded zero rows/lanes at exactly 0.
        ratio = p_c * pl.reciprocal(t_c, approx=True)
        return jnp.sum(jnp.where(p_c == t_c, jnp.float32(0.0),
                                 jnp.abs(jnp.log(ratio))))

    slog = _log_l1(p_mag, t_mag) + _log_l1(p_nyq, t_nyq)

    acc_ref[0] += ssd
    acc_ref[1] += sst
    acc_ref[2] += slog

    @pl.when(step == pl.num_programs(0) - 1)
    def _finalize():
        lane = jax.lax.broadcasted_iota(jnp.int32, out_ref.shape, 1)
        out_ref[...] = jnp.where(
            lane == 0, acc_ref[0],
            jnp.where(lane == 1, acc_ref[1],
                      jnp.where(lane == 2, acc_ref[2], jnp.float32(0.0))))


def _stft_loss_sums(frames, rhs):
    """frames: (2, R, n_fft) bf16 (pred rows | targ rows); rhs: (n_fft, n_fft+128) bf16.

    Returns (sum((|T|-|P|)^2), sum(|T|^2), sum(|log|P|-log|T||)) over all rows
    and all n_fft/2 + 1 one-sided frequency bins.
    """
    _, r, n_fft = frames.shape
    w_cols = rhs.shape[1]

    # Row tile: keep tm*n_fft roughly constant (~512K elems) so per-step VMEM
    # (~20-25 MiB with f32 intermediates) fits every generation including
    # v7x's 64 MiB, while amortizing per-grid-step pipeline overhead.
    r8 = -(-r // 8) * 8
    tm = max(8, min(1024, (1 << 19) // n_fft))
    tm = min(tm, r8)
    tm = -(-tm // 8) * 8
    tiles = -(-r // tm)
    r_pad = tiles * tm
    if r_pad != r:
        # Zero rows contribute exactly 0 to every accumulated sum.
        frames = jnp.pad(frames, ((0, 0), (0, r_pad - r), (0, 0)))

    flops = 2 * (2 * tm) * n_fft * w_cols * tiles
    transc = 3 * (2 * tm) * (n_fft // 2 + 128) * tiles     # sqrt + rcp + log
    bytes_acc = 2 * r_pad * n_fft * 2 + n_fft * w_cols * 2 + 128 * 4

    grid_spec = pltpu.PrefetchScalarGridSpec(
        num_scalar_prefetch=0,
        grid=(tiles,),
        in_specs=[
            pl.BlockSpec((2, tm, n_fft), lambda i: (0, i, 0)),
            pl.BlockSpec(memory_space=pl.ANY),    # RHS stays in HBM; copied once
        ],
        out_specs=pl.BlockSpec((1, 128), lambda i: (0, 0)),
        scratch_shapes=[
            pltpu.VMEM((n_fft, w_cols), jnp.bfloat16),   # resident DFT basis
            pltpu.SemaphoreType.DMA,
            pltpu.SMEM((4,), jnp.float32),               # ssd / sst / slog
        ],
    )
    acc = pl.pallas_call(
        _stft_loss_kernel,
        out_shape=jax.ShapeDtypeStruct((1, 128), jnp.float32),
        grid_spec=grid_spec,
        compiler_params=pltpu.CompilerParams(
            dimension_semantics=("arbitrary",),
            vmem_limit_bytes=48 * 1024 * 1024),
        cost_estimate=pl.CostEstimate(flops=int(flops),
                                      transcendentals=int(transc),
                                      bytes_accessed=int(bytes_acc)),
    )(frames, rhs)
    return acc[0, 0], acc[0, 1], acc[0, 2]


class MultiResolutionSTFTLoss:
    """JAX/Pallas port of the PyTorch MultiResolutionSTFTLoss (forward only)."""

    def __init__(self, fft_sizes=(512, 1024, 2048), hop_sizes=(128, 256, 512),
                 win_lengths=(512, 1024, 2048), window='hann_window'):
        assert len(fft_sizes) == len(hop_sizes) == len(win_lengths)
        self.fft_sizes = list(fft_sizes)
        self.hop_sizes = list(hop_sizes)
        self.win_lengths = list(win_lengths)

        # Matches the PyTorch module exactly: ONE periodic window of length
        # max(win_lengths), SLICED per resolution (self.window[:win_length]).
        n_max = max(win_lengths)
        n = jnp.arange(n_max, dtype=jnp.float32)
        if window == 'hann_window':
            self.window = 0.5 - 0.5 * jnp.cos(2.0 * jnp.pi * n / n_max)
        else:
            self.window = 0.54 - 0.46 * jnp.cos(2.0 * jnp.pi * n / n_max)

        # Per-resolution windowed DFT bases (bf16 MXU operands), laid out as
        #   [ diag(w)cos | -diag(w)sin | nyquist | zero-pad to +128 lanes ]
        # so the full one-sided spectrum (incl. Nyquist) comes out of a single
        # lane-aligned matmul.
        self._rhs = []
        for n_fft, win_len in zip(self.fft_sizes, self.win_lengths):
            w = self._window_for(n_fft, win_len)                 # (n_fft,) f32
            f = n_fft // 2
            n_idx = jnp.arange(n_fft, dtype=jnp.float32)[:, None]
            k_idx = jnp.arange(f, dtype=jnp.float32)[None, :]
            ang = 2.0 * jnp.pi * n_idx * k_idx / n_fft
            cos_m = jnp.cos(ang) * w[:, None]                    # window folded in
            sin_m = -jnp.sin(ang) * w[:, None]
            nyq = (w * jnp.cos(jnp.pi * jnp.arange(n_fft, dtype=jnp.float32)))[:, None]
            pad = jnp.zeros((n_fft, 127), jnp.float32)
            rhs = jnp.concatenate([cos_m, sin_m, nyq, pad], axis=1)  # (n_fft, n_fft+128)
            self._rhs.append(rhs.astype(jnp.bfloat16))

    def _window_for(self, n_fft, win_length):
        # torch.stft zero-center-pads the window to n_fft if win_length < n_fft.
        w = self.window[:win_length]
        if win_length < n_fft:
            left = (n_fft - win_length) // 2
            w = jnp.zeros((n_fft,), jnp.float32).at[left:left + win_length].set(w)
        return w

    @staticmethod
    def _frame(wav, n_fft, hop):
        # torch.stft(center=True, pad_mode='reflect') framing applied to the
        # stacked (2, B, T) pred|targ waveform: frames land in HBM once,
        # directly in bf16, already in the layout the kernel consumes.
        pad = n_fft // 2
        x_pad = jnp.pad(wav, ((0, 0), (0, 0), (pad, pad)), mode='reflect')
        t_pad = x_pad.shape[-1]
        n_frames = 1 + (t_pad - n_fft) // hop
        idx = jnp.arange(n_frames)[:, None] * hop + jnp.arange(n_fft)[None, :]
        frames = x_pad[:, :, idx]                    # (2, B, n_frames, n_fft)
        return frames.reshape(2, -1, n_fft), n_frames

    def __call__(self, pred_waveform, target_waveform):
        # pred/target: [B, 1, T]
        pred = pred_waveform.astype(jnp.float32)[:, 0, :]
        targ = target_waveform.astype(jnp.float32)[:, 0, :]
        b = pred.shape[0]
        # One bf16 waveform stack; the per-resolution gather then writes bf16
        # frames directly (no separate f32 frame pass, no extra cast pass).
        wav = jnp.stack([pred, targ], axis=0).astype(jnp.bfloat16)   # (2, B, T)

        sc_loss = jnp.float32(0.0)
        mag_loss = jnp.float32(0.0)
        for res, (n_fft, hop) in enumerate(zip(self.fft_sizes, self.hop_sizes)):
            # TODO(synk): framing is still an XLA reflect-pad + gather; an
            # in-kernel pl.ds-window framer over the raw waveform would remove
            # the remaining ~4x frame duplication in HBM.
            frames, n_frames = self._frame(wav, n_fft, hop)   # (2, B*n_frames, n_fft)
            ssd, sst, slog = _stft_loss_sums(frames, self._rhs[res])

            n_freq = n_fft // 2 + 1
            sc_loss = sc_loss + jnp.sqrt(ssd) / (jnp.sqrt(sst) + 1e-7)
            mag_loss = mag_loss + slog / jnp.float32(b * n_frames * n_freq)

        n_res = len(self.fft_sizes)
        return sc_loss / n_res, mag_loss / n_res


def _reference_loss(loss_mod, pred, targ):
    """Pure-JAX f32 rfft reference with identical semantics."""
    pred2 = pred.astype(jnp.float32)[:, 0, :]
    targ2 = targ.astype(jnp.float32)[:, 0, :]
    sc = jnp.float32(0.0)
    mg = jnp.float32(0.0)
    for n_fft, hop, win_len in zip(loss_mod.fft_sizes, loss_mod.hop_sizes,
                                   loss_mod.win_lengths):
        w = loss_mod._window_for(n_fft, win_len)

        def mag(x2d):
            p = n_fft // 2
            xp = jnp.pad(x2d, ((0, 0), (p, p)), mode='reflect')
            nfr = 1 + (xp.shape[1] - n_fft) // hop
            idx = jnp.arange(nfr)[:, None] * hop + jnp.arange(n_fft)[None, :]
            fr = xp[:, idx].reshape(-1, n_fft)
            return jnp.abs(jnp.fft.rfft(fr * w[None, :], n=n_fft, axis=-1))

        pm = mag(pred2)
        tm = mag(targ2)
        sc = sc + jnp.linalg.norm(tm - pm) / (jnp.linalg.norm(tm) + 1e-7)
        mg = mg + jnp.mean(jnp.abs(jnp.log(jnp.maximum(pm, 1e-7)) -
                                   jnp.log(jnp.maximum(tm, 1e-7))))
    n_res = len(loss_mod.fft_sizes)
    return sc / n_res, mg / n_res


if __name__ == "__main__":
    key = jax.random.PRNGKey(0)
    k1, k2 = jax.random.split(key)
    B, T = 2, 256
    pred = jax.random.normal(k1, (B, 1, T), jnp.float32)
    targ = jax.random.normal(k2, (B, 1, T), jnp.float32)

    # Small resolutions consistent with the module's parameterization.
    loss = MultiResolutionSTFTLoss(fft_sizes=[64, 128, 256],
                                   hop_sizes=[16, 32, 64],
                                   win_lengths=[64, 128, 256])

    sc, mg = loss(pred, targ)
    (sc, mg) = jax.block_until_ready((sc, mg))

    sc_ref, mg_ref = _reference_loss(loss, pred, targ)
    assert abs(float(sc) - float(sc_ref)) < 2e-2 * max(1.0, abs(float(sc_ref))), (
        float(sc), float(sc_ref))
    assert abs(float(mg) - float(mg_ref)) < 2e-2 * max(1.0, abs(float(mg_ref))), (
        float(mg), float(mg_ref))

    print("KERNEL_OK")
</pallas_src>

<mosaic_0001>
module attributes {stable_mosaic.version = 11 : i64} {
  func.func @_stft_loss_kernel(%arg0: i32, %arg1: memref<2x40x64xbf16, #tpu.memory_space<vmem>>, %arg2: memref<64x192xbf16, #tpu.memory_space<any>>, %arg3: memref<1x128xf32, #tpu.memory_space<vmem>>, %arg4: memref<64x192xbf16, #tpu.memory_space<vmem>>, %arg5: memref<!tpu.dma_semaphore, #tpu.memory_space<semaphore_mem>>, %arg6: memref<4xf32, #tpu.memory_space<smem>>) attributes {dimension_semantics = [#tpu.dimension_semantics<arbitrary>], iteration_bounds = array<i64: 1>, scalar_prefetch = 0 : i64, scratch_operands = 3 : i64, tpu.core_type = #tpu.core_type<tc>, window_params = [{transform_indices = @transform_0, window_bounds = array<i64: 2, 40, 64>}, {}, {pipeline_mode = #tpu.pipeline_mode<synchronous>, transform_indices = @transform_2, window_bounds = array<i64: 1, 128>}]} {
    %c0_i32 = arith.constant 0 : i32
    %0 = arith.cmpi eq, %arg0, %c0_i32 : i32
    %1 = arith.extui %0 : i1 to i32
    %c0_i32_0 = arith.constant 0 : i32
    %2 = arith.cmpi ne, %1, %c0_i32_0 : i32
    scf.if %2 {
      tpu.enqueue_dma source(%arg2 : memref<64x192xbf16, #tpu.memory_space<any>>) target(%arg4 : memref<64x192xbf16, #tpu.memory_space<vmem>>) target_semaphore(%arg5 : memref<!tpu.dma_semaphore, #tpu.memory_space<semaphore_mem>>)
      tpu.wait_dma2 semaphore(%arg5 : memref<!tpu.dma_semaphore, #tpu.memory_space<semaphore_mem>>) src(%arg2 : memref<64x192xbf16, #tpu.memory_space<any>>) dst(%arg4 : memref<64x192xbf16, #tpu.memory_space<vmem>>)
      %cst_23 = arith.constant 0.000000e+00 : f32
      %c0_24 = arith.constant 0 : index
      %92 = memref.load %arg6[%c0_24] : memref<4xf32, #tpu.memory_space<smem>>
      memref.store %cst_23, %arg6[%c0_24] : memref<4xf32, #tpu.memory_space<smem>>
      %cst_25 = arith.constant 0.000000e+00 : f32
      %c1_26 = arith.constant 1 : index
      %93 = memref.load %arg6[%c1_26] : memref<4xf32, #tpu.memory_space<smem>>
      memref.store %cst_25, %arg6[%c1_26] : memref<4xf32, #tpu.memory_space<smem>>
      %cst_27 = arith.constant 0.000000e+00 : f32
      %c2_28 = arith.constant 2 : index
      %94 = memref.load %arg6[%c2_28] : memref<4xf32, #tpu.memory_space<smem>>
      memref.store %cst_27, %arg6[%c2_28] : memref<4xf32, #tpu.memory_space<smem>>
    } else {
    }
    %c0 = arith.constant 0 : index
    %c0_1 = arith.constant 0 : index
    %c0_2 = arith.constant 0 : index
    %3 = vector.load %arg1[%c0, %c0_1, %c0_2] : memref<2x40x64xbf16, #tpu.memory_space<vmem>>, vector<2x40x64xbf16>
    %4 = vector.shape_cast %3 : vector<2x40x64xbf16> to vector<80x64xbf16>
    %c0_3 = arith.constant 0 : index
    %c0_4 = arith.constant 0 : index
    %5 = vector.load %arg4[%c0_3, %c0_4] : memref<64x192xbf16, #tpu.memory_space<vmem>>, vector<64x192xbf16>
    %cst = arith.constant dense<0.000000e+00> : vector<80x192xf32>
    %6 = tpu.matmul %4, %5, %cst {dimension_numbers = #tpu.dot_dimension_numbers<[1], [0], [0], [1], [0, 0, 1, 1], [], []>} : vector<80x64xbf16>, vector<64x192xbf16>, vector<80x192xf32> -> vector<80x192xf32>
    %7 = vector.extract_strided_slice %6 {offsets = [0, 0], sizes = [40, 192], strides = [1, 1]} : vector<80x192xf32> to vector<40x192xf32>
    %8 = vector.extract_strided_slice %6 {offsets = [40, 0], sizes = [40, 192], strides = [1, 1]} : vector<80x192xf32> to vector<40x192xf32>
    %9 = vector.extract_strided_slice %7 {offsets = [0, 0], sizes = [40, 32], strides = [1, 1]} : vector<40x192xf32> to vector<40x32xf32>
    %10 = vector.extract_strided_slice %7 {offsets = [0, 32], sizes = [40, 32], strides = [1, 1]} : vector<40x192xf32> to vector<40x32xf32>
    %11 = arith.mulf %9, %9 : vector<40x32xf32>
    %12 = arith.mulf %10, %10 : vector<40x32xf32>
    %13 = arith.addf %11, %12 : vector<40x32xf32>
    %14 = math.sqrt %13 : vector<40x32xf32>
    %15 = vector.extract_strided_slice %7 {offsets = [0, 64], sizes = [40, 128], strides = [1, 1]} : vector<40x192xf32> to vector<40x128xf32>
    %16 = math.absf %15 : vector<40x128xf32>
    %17 = vector.extract_strided_slice %8 {offsets = [0, 0], sizes = [40, 32], strides = [1, 1]} : vector<40x192xf32> to vector<40x32xf32>
    %18 = vector.extract_strided_slice %8 {offsets = [0, 32], sizes = [40, 32], strides = [1, 1]} : vector<40x192xf32> to vector<40x32xf32>
    %19 = arith.mulf %17, %17 : vector<40x32xf32>
    %20 = arith.mulf %18, %18 : vector<40x32xf32>
    %21 = arith.addf %19, %20 : vector<40x32xf32>
    %22 = math.sqrt %21 : vector<40x32xf32>
    %23 = vector.extract_strided_slice %8 {offsets = [0, 64], sizes = [40, 128], strides = [1, 1]} : vector<40x192xf32> to vector<40x128xf32>
    %24 = math.absf %23 : vector<40x128xf32>
    %25 = arith.subf %22, %14 : vector<40x32xf32>
    %26 = arith.subf %24, %16 : vector<40x128xf32>
    %27 = arith.mulf %25, %25 : vector<40x32xf32>
    %28 = vector.shape_cast %27 : vector<40x32xf32> to vector<1x40x32xf32>
    %cst_5 = arith.constant dense<0.000000e+00> : vector<1xf32>
    %29 = vector.multi_reduction <add>, %28, %cst_5 [1, 2] : vector<1x40x32xf32> to vector<1xf32>
    %30 = vector.shape_cast %29 : vector<1xf32> to vector<1x1x1xf32>
    %31 = vector.extract %30[0, 0, 0] : f32 from vector<1x1x1xf32>
    %32 = arith.mulf %26, %26 : vector<40x128xf32>
    %33 = vector.shape_cast %32 : vector<40x128xf32> to vector<1x40x128xf32>
    %cst_6 = arith.constant dense<0.000000e+00> : vector<1xf32>
    %34 = vector.multi_reduction <add>, %33, %cst_6 [1, 2] : vector<1x40x128xf32> to vector<1xf32>
    %35 = vector.shape_cast %34 : vector<1xf32> to vector<1x1x1xf32>
    %36 = vector.extract %35[0, 0, 0] : f32 from vector<1x1x1xf32>
    %37 = arith.addf %31, %36 : f32
    %38 = arith.mulf %22, %22 : vector<40x32xf32>
    %39 = vector.shape_cast %38 : vector<40x32xf32> to vector<1x40x32xf32>
    %cst_7 = arith.constant dense<0.000000e+00> : vector<1xf32>
    %40 = vector.multi_reduction <add>, %39, %cst_7 [1, 2] : vector<1x40x32xf32> to vector<1xf32>
    %41 = vector.shape_cast %40 : vector<1xf32> to vector<1x1x1xf32>
    %42 = vector.extract %41[0, 0, 0] : f32 from vector<1x1x1xf32>
    %43 = arith.mulf %24, %24 : vector<40x128xf32>
    %44 = vector.shape_cast %43 : vector<40x128xf32> to vector<1x40x128xf32>
    %cst_8 = arith.constant dense<0.000000e+00> : vector<1xf32>
    %45 = vector.multi_reduction <add>, %44, %cst_8 [1, 2] : vector<1x40x128xf32> to vector<1xf32>
    %46 = vector.shape_cast %45 : vector<1xf32> to vector<1x1x1xf32>
    %47 = vector.extract %46[0, 0, 0] : f32 from vector<1x1x1xf32>
    %48 = arith.addf %42, %47 : f32
    %cst_9 = arith.constant 1.000000e-07 : f32
    %49 = vector.broadcast %cst_9 : f32 to vector<40x32xf32>
    %50 = arith.maximumf %14, %49 : vector<40x32xf32>
    %cst_10 = arith.constant 1.000000e-07 : f32
    %51 = vector.broadcast %cst_10 : f32 to vector<40x32xf32>
    %52 = arith.maximumf %22, %51 : vector<40x32xf32>
    %53 = tpu.reciprocal %52 {approx = true} : vector<40x32xf32> -> vector<40x32xf32>
    %54 = arith.mulf %50, %53 : vector<40x32xf32>
    %55 = arith.cmpf oeq, %50, %52 : vector<40x32xf32>
    %56 = math.log %54 : vector<40x32xf32>
    %57 = math.absf %56 : vector<40x32xf32>
    %cst_11 = arith.constant 0.000000e+00 : f32
    %58 = vector.broadcast %cst_11 : f32 to vector<40x32xf32>
    %59 = arith.select %55, %58, %57 : vector<40x32xi1>, vector<40x32xf32>
    %60 = vector.shape_cast %59 : vector<40x32xf32> to vector<1x40x32xf32>
    %cst_12 = arith.constant dense<0.000000e+00> : vector<1xf32>
    %61 = vector.multi_reduction <add>, %60, %cst_12 [1, 2] : vector<1x40x32xf32> to vector<1xf32>
    %62 = vector.shape_cast %61 : vector<1xf32> to vector<1x1x1xf32>
    %63 = vector.extract %62[0, 0, 0] : f32 from vector<1x1x1xf32>
    %cst_13 = arith.constant 1.000000e-07 : f32
    %64 = vector.broadcast %cst_13 : f32 to vector<40x128xf32>
    %65 = arith.maximumf %16, %64 : vector<40x128xf32>
    %cst_14 = arith.constant 1.000000e-07 : f32
    %66 = vector.broadcast %cst_14 : f32 to vector<40x128xf32>
    %67 = arith.maximumf %24, %66 : vector<40x128xf32>
    %68 = tpu.reciprocal %67 {approx = true} : vector<40x128xf32> -> vector<40x128xf32>
    %69 = arith.mulf %65, %68 : vector<40x128xf32>
    %70 = arith.cmpf oeq, %65, %67 : vector<40x128xf32>
    %71 = math.log %69 : vector<40x128xf32>
    %72 = math.absf %71 : vector<40x128xf32>
    %cst_15 = arith.constant 0.000000e+00 : f32
    %73 = vector.broadcast %cst_15 : f32 to vector<40x128xf32>
    %74 = arith.select %70, %73, %72 : vector<40x128xi1>, vector<40x128xf32>
    %75 = vector.shape_cast %74 : vector<40x128xf32> to vector<1x40x128xf32>
    %cst_16 = arith.constant dense<0.000000e+00> : vector<1xf32>
    %76 = vector.multi_reduction <add>, %75, %cst_16 [1, 2] : vector<1x40x128xf32> to vector<1xf32>
    %77 = vector.shape_cast %76 : vector<1xf32> to vector<1x1x1xf32>
    %78 = vector.extract %77[0, 0, 0] : f32 from vector<1x1x1xf32>
    %79 = arith.addf %63, %78 : f32
    %c0_17 = arith.constant 0 : index
    %80 = memref.load %arg6[%c0_17] : memref<4xf32, #tpu.memory_space<smem>>
    %81 = arith.addf %80, %37 : f32
    %c0_18 = arith.constant 0 : index
    %82 = memref.load %arg6[%c0_18] : memref<4xf32, #tpu.memory_space<smem>>
    memref.store %81, %arg6[%c0_18] : memref<4xf32, #tpu.memory_space<smem>>
    %c1 = arith.constant 1 : index
    %83 = memref.load %arg6[%c1] : memref<4xf32, #tpu.memory_space<smem>>
    %84 = arith.addf %83, %48 : f32
    %c1_19 = arith.constant 1 : index
    %85 = memref.load %arg6[%c1_19] : memref<4xf32, #tpu.memory_space<smem>>
    memref.store %84, %arg6[%c1_19] : memref<4xf32, #tpu.memory_space<smem>>
    %c2 = arith.constant 2 : index
    %86 = memref.load %arg6[%c2] : memref<4xf32, #tpu.memory_space<smem>>
    %87 = arith.addf %86, %79 : f32
    %c2_20 = arith.constant 2 : index
    %88 = memref.load %arg6[%c2_20] : memref<4xf32, #tpu.memory_space<smem>>
    memref.store %87, %arg6[%c2_20] : memref<4xf32, #tpu.memory_space<smem>>
    %c0_i32_21 = arith.constant 0 : i32
    %89 = arith.cmpi eq, %arg0, %c0_i32_21 : i32
    %90 = arith.extui %89 : i1 to i32
    %c0_i32_22 = arith.constant 0 : i32
    %91 = arith.cmpi ne, %90, %c0_i32_22 : i32
    scf.if %91 {
      %92 = tpu.iota {dimensions = array<i32: 1>} : vector<1x128xi32>
      %c0_i32_23 = arith.constant 0 : i32
      %93 = vector.broadcast %c0_i32_23 : i32 to vector<1x128xi32>
      %94 = arith.cmpi eq, %92, %93 : vector<1x128xi32>
      %c0_24 = arith.constant 0 : index
      %95 = memref.load %arg6[%c0_24] : memref<4xf32, #tpu.memory_space<smem>>
      %c1_i32 = arith.constant 1 : i32
      %96 = vector.broadcast %c1_i32 : i32 to vector<1x128xi32>
      %97 = arith.cmpi eq, %92, %96 : vector<1x128xi32>
      %c1_25 = arith.constant 1 : index
      %98 = memref.load %arg6[%c1_25] : memref<4xf32, #tpu.memory_space<smem>>
      %c2_i32 = arith.constant 2 : i32
      %99 = vector.broadcast %c2_i32 : i32 to vector<1x128xi32>
      %100 = arith.cmpi eq, %92, %99 : vector<1x128xi32>
      %c2_26 = arith.constant 2 : index
      %101 = memref.load %arg6[%c2_26] : memref<4xf32, #tpu.memory_space<smem>>
      %cst_27 = arith.constant 0.000000e+00 : f32
      %102 = vector.broadcast %101 : f32 to vector<1x128xf32>
      %103 = vector.broadcast %cst_27 : f32 to vector<1x128xf32>
      %104 = arith.select %100, %102, %103 : vector<1x128xi1>, vector<1x128xf32>
      %105 = vector.broadcast %98 : f32 to vector<1x128xf32>
      %106 = arith.select %97, %105, %104 : vector<1x128xi1>, vector<1x128xf32>
      %107 = vector.broadcast %95 : f32 to vector<1x128xf32>
      %108 = arith.select %94, %107, %106 : vector<1x128xi1>, vector<1x128xf32>
      %c0_28 = arith.constant 0 : index
      %c0_29 = arith.constant 0 : index
      %109 = vector.load %arg3[%c0_28, %c0_29] : memref<1x128xf32, #tpu.memory_space<vmem>>, vector<1x128xf32>
      tpu.vector_store %arg3[%c0_28, %c0_29], %108 {strides = array<i32>} : memref<1x128xf32, #tpu.memory_space<vmem>>, vector<1x128xf32>,
    } else {
    }
    return
  }
  func.func @transform_0(%arg0: i32) -> (i32, i32, i32) {
    %c0_i32 = arith.constant 0 : i32
    %c0_i32_0 = arith.constant 0 : i32
    %c0_i32_1 = arith.constant 0 : i32
    return %c0_i32, %arg0, %c0_i32_0 : i32, i32, i32
  }
  func.func @transform_2(%arg0: i32) -> (i32, i32) {
    %c0_i32 = arith.constant 0 : i32
    %c0_i32_0 = arith.constant 0 : i32
    %c0_i32_1 = arith.constant 0 : i32
    return %c0_i32, %c0_i32_0 : i32, i32
  }
}

</mosaic_0001>

<bundles_post_ra>
// kernel: tpu_custom_call.1
= control target key start
LH: loop header
LB: loop body
LE: loop exit
PB: predicated region body
PF: predicated region fallthrough
CT: control target
= control target key end

     0   :  { %7 = vsyncpa [#allocation6], 0  ;;  %s1562_s0 = inlined_call_operand.hbm [shape: bf16[2,40,64], index: 0, kind: input, shape index: {}]   ;;  %s1563_s1 = inlined_call_operand.hbm [shape: bf16[64,192], index: 1, kind: input, shape index: {}]   ;;  %s1564_s2 = inlined_call_operand.hbm [shape: f32[1,128], index: 2, kind: output, shape index: {}]  }
   0x1   :  { %8 = vsyncpa [#allocation7], 0  ;;  %s1000_s9 = smov [#allocation5]   ;;  %s950_s13 = scalar_lea.hbm %s1562_s0, 640 }
   0x2   :  { %s14_s10 = sshll.u32 %s1000_s9, 4  ;;  %p951_p0 = scmp.ne.s32.totalorder %s1562_s0, %s950_s13  ;;  %s15_s10 = int_to_ptr.vmem [resolvable:$true] %s14_s10 }
   0x3   :  { %p954_p1 = scmp.lt.u32.totalorder %s950_s13, %s1562_s0 }
   0x5   :  { %p956_p2 = pnand %p954_p1, %p951_p0 }
   0x7   :  { %959 = shalt.err (!%p956_p2)
}
   0x8   :  { %s960_s18 = scalar_lea.vmem %s15_s10, 640  ;;  %p965_p4 = scmp.lt.s32.totalorder %s15_s10, %s15_s10 }
   0x9   :  { %p961_p3 = scmp.ne.s32.totalorder %s15_s10, %s960_s18  ;;  %p966_p5 = scmp.lt.s32.totalorder %s960_s18, %s960_s18 }
   0xb   :  { %p967_p6 = por %p966_p5, %p965_p4 }
   0xd   :  { %p968_p7 = pnand %p967_p6, %p961_p3 }
   0xf   :  { %971 = shalt.err (!%p968_p7)
}
  0x10   :  { %s1001_s19 = smov 64   ;;  %s1002_s20 = smov 4  }
  0x11   :  { %20 = dma.hbm_to_vmem [thread:$0]  %s1562_s0, 640, %s15_s10, [#allocation6], %s1001_s19, %s1001_s19, %s1002_s20  }
  0x12   :  { %994 = dma.done.wait [#allocation6], 640  }
  0x13   :  { %995 = vsyncadd [#allocation6], 4294966656 }
  0x14   :  { %s33_s23 = sld [smem:[#allocation0]]   ;;  %s1003_s24 = smov [#allocation2]  }
  0x15   :  { %s41_s25 = sshll.u32 %s1003_s24, 4  ;;  %s1004_s26 = smov 256   ;;  %s42_s25 = int_to_ptr.vmem [resolvable:$true] %s41_s25 }
  0x16   :  { %45 = sst [smem:[#allocation10]] %s1004_s26  ;;  %s1005_s27 = smov 2  }
  0x17   :  { %47 = sst [smem:[#allocation10 + $0x1]] %s1004_s26  ;;  %s1006_s28 = smov 64  }
  0x18   :  { %49 = sst [smem:[#allocation10 + $0x2]] %s1005_s27  ;;  %s1007_s30 = smov 128  }
  0x19   :  { %51 = sst [smem:[#allocation10 + $0x3]] %s1006_s28  ;;  %s1008_s0 = smov 4  }
  0x1a   :  { %s814_s29 = sshll.u32 %s33_s23, 26  ;;  %53 = sst [smem:[#allocation10 + $0x4]] %s1007_s30 }
  0x1b   :  { %s815_s3 = sadd.s32 134217728, %s814_s29  ;;  %55 = sst [smem:[#allocation10 + $0x5]] %s1005_s27 }
  0x1c   :  { %57 = sst [smem:[#allocation10 + $0x6]] %s1007_s30  ;;  %s1009_s4 = smov [#allocation3]  }
  0x1d   :  { %59 = sst [smem:[#allocation10 + $0x7]] %s1006_s28  ;;  %s1010_s5 = smov [#allocation9]  }
  0x1e   :  { %61 = sst [smem:[#allocation10 + $0x8]] %s1008_s0 }
  0x1f   :  { %63 = dma.general %s1563_s1, 1024, %s42_s25, %s1009_s4, %s1010_s5, [#allocation10], %s815_s3, 0  }
  0x20   :  { %996 = dma.done.wait [#allocation3], 1024 }
  0x21   :  { %997 = vsyncadd [#allocation3], 4294966272  ;;  %v85_v0 = vld [vmem:[#allocation2 + $0x8] sm:$0xff]  ;;  %v84_v1 = vld [vmem:[#allocation2] sm:$0xff]  ;;  %v1011_v5 = vmov 0   ;;  %vm117_vm0 = vcmask 523264  }
  0x22   :  { %v87_v2 = vld [vmem:[#allocation2 + $0x18] sm:$0xff]  ;;  %133 = vmatprep.subr.bf16.mxu0 %v85_v0  ;;  %831 = vmatprep.subr.bf16.mxu1 %v85_v0  ;;  %v86_v3 = vld [vmem:[#allocation2 + $0x10] sm:$0xff]  ;;  %v89_v4 = vld [vmem:[#allocation2 + $0x28] sm:$0xff]  ;;  %s1012_s1 = smov 96   ;;  %s1013_s17 = smov [#allocation8]  }
  0x23   :  { %134 = vmatpush1.bf16.msra.mxu0 %v84_v1  ;;  %835 = vmatpush1.bf16.msra.mxu1 %v84_v1  ;;  %v88_v6 = vld [vmem:[#allocation2 + $0x20] sm:$0xff]  ;;  %v91_v7 = vld [vmem:[#allocation2 + $0x38] sm:$0xff]  ;;  %v90_v8 = vld [vmem:[#allocation2 + $0x30] sm:$0xff]  ;;  %s799_s18 = sshll.u32 %s1013_s17, 4  ;;  %s800_s18 = int_to_ptr.vmem [resolvable:$true] %s799_s18 }
  0x24   :  { %135 = vmatprep.subr.bf16.mxu0 %v87_v2  ;;  %832 = vmatprep.subr.bf16.mxu1 %v87_v2  ;;  %v865_v9 = vld [vmem:[#allocation5] sm:$0xff]   ;;  %v866_v10 = vld [vmem:[#allocation5 + $0x18] sm:$0xff]   ;;  %v867_v11 = vld [vmem:[#allocation5 + $0x8] sm:$0xff]   ;;  %s976_s20 = scalar_lea.vmem %s800_s18, 32  ;;  %p977_p9 = scmp.lt.s32.totalorder %s800_s18, %s800_s18 }
  0x25   :  { %165 = vmatprep.mubr.bf16.mxu0 %v1011_v5  ;;  %195 = vmatprep.mubr.bf16.mxu1 %v1011_v5  ;;  %v868_v12 = vld [vmem:[#allocation5 + $0x20] sm:$0xff]   ;;  %v869_v13 = vld [vmem:[#allocation5 + $0x10] sm:$0xff]  }
  0x27   :  { %136 = vmatpush1.bf16.msra.mxu0 %v86_v3  ;;  %836 = vmatpush1.bf16.msra.mxu1 %v86_v3 }
  0x28   :  { %137 = vmatprep.subr.bf16.mxu0 %v89_v4  ;;  %833 = vmatprep.subr.bf16.mxu1 %v89_v4 }
  0x2b   :  { %138 = vmatpush1.bf16.msra.mxu0 %v88_v6  ;;  %837 = vmatpush1.bf16.msra.mxu1 %v88_v6 }
  0x2c   :  { %139 = vmatprep.subr.bf16.mxu0 %v91_v7  ;;  %834 = vmatprep.subr.bf16.mxu1 %v91_v7 }
  0x2f   :  { %140 = vmatpush1.bf16.msra.mxu0 %v90_v8  ;;  %838 = vmatpush1.bf16.msra.mxu1 %v90_v8 }
  0x32   :  { %821 = vmatmul.mubr.msk.bf16.vlgmr.msra.gmra.mrb[0].mxu0 %vm117_vm0, %v865_v9  ;;  %824 = vmatmul.mubr.msk.bf16.vlgmr.msra.gmra.mrb[0].mxu1 %vm117_vm0, %v866_v10 }
  0x33   :  { %175 = vmatprep.mubr.bf16.mxu0 %v1011_v5  ;;  %205 = vmatprep.mubr.bf16.mxu1 %v1011_v5 }
  0x3a   :  { %822 = vmatmul.mubr.msk.bf16.gmra.mrb[4].mxu0 %vm117_vm0, %v867_v11  ;;  %825 = vmatmul.mubr.msk.bf16.gmra.mrb[4].mxu1 %vm117_vm0, %v868_v12 }
  0x3b   :  { %185 = vmatprep.mubr.bf16.mxu0 %v1011_v5 }
  0x42   :  { %823 = vmatmul.mubr.msk.bf16.gmra.mrb[8].mxu0 %vm117_vm0, %v869_v13 }
 0x105   :  { %v1051_v14 = vpop.f32.mrb[0].mxu0  ;;  %v197_v15 = vpop.f32.mrb[0].mxu1 }
 0x106   :  { %v1053_v16 = vpop.f32.mrb[1].mxu0  ;;  %v199_v17 = vpop.f32.mrb[1].mxu1  ;;  %v1055_v18 = vmul.f32 %v197_v15, %v197_v15  ;;  %v1059_v19 = vmul.f32 %v1051_v14, %v1051_v14  ;;  %v1061_v20 = vand.u32 2147483647, %v197_v15  ;;  %v281_v0 = vand.u32 2147483647, %v1051_v14 }
 0x107   :  { %v171_v21 = vpop.f32.mrb[2].mxu0  ;;  %v201_v22 = vpop.f32.mrb[2].mxu1  ;;  %v1063_v23 = vand.u32 2147483647, %v199_v17  ;;  %v282_v3 = vand.u32 2147483647, %v1053_v16 }
 0x108   :  { %v283_v24 = vand.u32 2147483647, %v171_v21  ;;  %303 = vrot.lane.b32.xlu0 %v1055_v18, %s1012_s1  ;;  %v203_v25 = vpop.f32.mrb[3].mxu1  ;;  %226 = vrot.lane.b32.xlu1 %v1059_v19, %s1012_s1  ;;  %v173_v26 = vpop.f32.mrb[3].mxu0  ;;  %v1069_v27 = vmul.f32 %v171_v21, %v171_v21  ;;  %v1071_v29 = vmul.f32 %v201_v22, %v201_v22  ;;  %v1073_v30 = vand.u32 2147483647, %v201_v22 }
 0x109   :  { %v284_v28 = vand.u32 2147483647, %v173_v26  ;;  %v1078_v33 = vand.u32 2147483647, %v203_v25  ;;  %v631_v36 = vmax.f32 %v1061_v20, 1e-07 }
 0x10a   :  { %v373_v31 = vsub.f32 %v1061_v20, %v283_v24  ;;  %v1076_v32 = vmax.f32 %v283_v24, 1e-07  ;;  %v632_v37 = vmax.f32 %v1063_v23, 1e-07  ;;  %v633_v46 = vmax.f32 %v1073_v30, 1e-07 }
 0x10b   :  { %v1080_v34 = vmax.f32 %v284_v28, 1e-07  ;;  %v374_v35 = vsub.f32 %v1063_v23, %v284_v28  ;;  %870 = vrcp.f32 %v631_v36  ;;  %v634_v51 = vmax.f32 %v1078_v33, 1e-07 }
 0x10c   :  { %305 = vrot.lane.b32.xlu1 %v1071_v29, %s1012_s1  ;;  %228 = vrot.lane.b32.xlu0 %v1069_v27, %s1012_s1  ;;  %vm1090_vm1 = vcmp.eq.f32.partialorder %v1076_v32, %v631_v36  ;;  %v407_v45 = vmul.f32 %v373_v31, %v373_v31  ;;  %872 = vrcp.f32 %v632_v37 }
 0x10d   :  { %v177_v38 = vpop.f32.mrb[4].mxu0  ;;  %v207_v39 = vpop.f32.mrb[4].mxu1  ;;  %v408_v40 = vmul.f32 %v374_v35, %v374_v35  ;;  %vm1096_vm2 = vcmp.eq.f32.partialorder %v1080_v34, %v632_v37  ;;  %874 = vrcp.f32 %v633_v46 }
 0x10e   :  { %v285_v42 = vand.u32 2147483647, %v177_v38  ;;  %v179_v43 = vpop.f32.mrb[5].mxu0  ;;  %v209_v44 = vpop.f32.mrb[5].mxu1  ;;  %v1101_v52 = vand.u32 2147483647, %v207_v39  ;;  %v1112_v60 = vmul.f32 %v207_v39, %v207_v39  ;;  %876 = vrcp.f32 %v634_v51 }
 0x10f   :  { %v286_v47 = vand.u32 2147483647, %v179_v43  ;;  %v181_v48 = vpop.f32.mrb[6].mxu0  ;;  %v211_v49 = vpop.f32.mrb[6].mxu1  ;;  %v1107_v57 = vand.u32 2147483647, %v209_v44  ;;  %v1146_v10 = vmul.f32 %v177_v38, %v177_v38 }
 0x110   :  { %v287_v53 = vand.u32 2147483647, %v181_v48  ;;  %v213_v54 = vpop.f32.mrb[7].mxu1  ;;  %429 = vrot.lane.b32.xlu0 %v407_v45, %s1001_s19  ;;  %431 = vrot.lane.b32.xlu1 %v408_v40, %s1001_s19  ;;  %v183_v55 = vpop.f32.mrb[7].mxu0  ;;  %v1114_v61 = vmul.f32 %v211_v49, %v211_v49  ;;  %v1117_v62 = vsub.f32 %v1073_v30, %v285_v42  ;;  %v623_v2 = vmax.f32 %v285_v42, 1e-07 }
 0x111   :  { %v1105_v56 = vmax.f32 %v286_v47, 1e-07  ;;  %v288_v58 = vand.u32 2147483647, %v183_v55  ;;  %v1110_v59 = vsub.f32 %v1078_v33, %v286_v47  ;;  %v1127_v4 = vand.u32 2147483647, %v211_v49 }
 0x112   :  { %v1120_v63 = vsub.f32 %v1101_v52, %v287_v53  ;;  %v1138_v6 = vand.u32 2147483647, %v213_v54  ;;  %vm1142_vm4 = vcmp.eq.f32.partialorder %v623_v2, %v633_v46  ;;  %v1148_v11 = vmul.f32 %v181_v48, %v181_v48 }
 0x113   :  { %v1124_v1 = vsub.f32 %v1107_v57, %v288_v58  ;;  %vm1134_vm3 = vcmp.eq.f32.partialorder %v1105_v56, %v634_v51  ;;  %v1140_v7 = vmax.f32 %v288_v58, 1e-07  ;;  %v635_v14 = vmax.f32 %v1101_v52, 1e-07 }
 0x114   :  { %309 = vrot.lane.b32.xlu0 %v1114_v61, %s1012_s1  ;;  %307 = vrot.lane.b32.xlu1 %v1112_v60, %s1012_s1  ;;  %v625_v21 = vmax.f32 %v287_v53, 1e-07  ;;  %v636_v28 = vmax.f32 %v1107_v57, 1e-07  ;;  %v620_v40 = vmax.f32 %v282_v3, 1e-07  ;;  %v494_v49 = vmul.f32 %v1061_v20, %v1061_v20 }
 0x115   :  { %v187_v8 = vpop.f32.mrb[8].mxu0  ;;  %v871_v15 = vpop.eup %870  ;;  %878 = vrcp.f32 %v635_v14  ;;  %v637_v53 = vmax.f32 %v1127_v4, 1e-07  ;;  %v638_v54 = vmax.f32 %v1138_v6, 1e-07 }
 0x116   :  { %v289_v12 = vand.u32 2147483647, %v187_v8  ;;  %v189_v13 = vpop.f32.mrb[9].mxu0  ;;  %v651_v26 = vmul.f32 %v871_v15, %v1076_v32  ;;  %v873_v31 = vpop.eup %872  ;;  %v1167_v37 = vmul.f32 %v187_v8, %v187_v8  ;;  %v495_v32 = vmul.f32 %v1063_v23, %v1063_v23 }
 0x117   :  { %v290_v16 = vand.u32 2147483647, %v189_v13  ;;  %v191_v17 = vpop.f32.mrb[10].mxu0  ;;  %v652_v43 = vmul.f32 %v873_v31, %v1080_v34  ;;  %vm1186_vm5 = vcmp.eq.f32.partialorder %v625_v21, %v635_v14  ;;  %vm1191_vm6 = vcmp.eq.f32.partialorder %v1140_v7, %v636_v28  ;;  %v875_v48 = vpop.eup %874 }
 0x118   :  { %v1151_v22 = vand.u32 2147483647, %v191_v17  ;;  %230 = vrot.lane.b32.xlu1 %v1146_v10, %s1012_s1  ;;  %232 = vrot.lane.b32.xlu0 %v1148_v11, %s1012_s1  ;;  %v193_v24 = vpop.f32.mrb[11].mxu0  ;;  %v1158_v25 = vsub.f32 %v1127_v4, %v289_v12  ;;  %v1169_v38 = vmul.f32 %v191_v17, %v191_v17  ;;  %880 = vlog2.f32 %v651_v26  ;;  %v877_v55 = vpop.eup %876 }
 0x119   :  { %v1162_v35 = vand.u32 2147483647, %v193_v24  ;;  %v1165_v36 = vsub.f32 %v1138_v6, %v290_v16  ;;  %v1180_v44 = vmax.f32 %v290_v16, 1e-07  ;;  %882 = vrcp.f32 %v636_v28 }
 0x11a   :  { %v1172_v39 = vsub.f32 %v1151_v22, %v281_v0  ;;  %884 = vlog2.f32 %v652_v43  ;;  %v619_v34 = vmax.f32 %v281_v0, 1e-07  ;;  %v629_v46 = vmax.f32 %v1151_v22, 1e-07 }
 0x11b   :  { %v1177_v42 = vsub.f32 %v1162_v35, %v282_v3  ;;  %v630_v47 = vmax.f32 %v1162_v35, 1e-07  ;;  %v627_v51 = vmax.f32 %v289_v12, 1e-07  ;;  %v653_v58 = vmul.f32 %v875_v48, %v623_v2 }
 0x11c   :  { %234 = vrot.lane.b32.xlu1 %v1167_v37, %s1012_s1  ;;  %301 = vrot.lane.b32.xlu0 %v1169_v38, %s1012_s1  ;;  %886 = vrcp.f32 %v629_v46  ;;  %vm1201_vm7 = vcmp.eq.f32.partialorder %v619_v34, %v629_v46  ;;  %v654_v20 = vmul.f32 %v877_v55, %v1105_v56  ;;  %vm1217_vm10 = vcmp.eq.f32.partialorder %v1180_v44, %v638_v54 }
 0x11d   :  { %vm1205_vm8 = vcmp.eq.f32.partialorder %v620_v40, %v630_v47  ;;  %888 = vrcp.f32 %v630_v47  ;;  %vm1212_vm9 = vcmp.eq.f32.partialorder %v627_v51, %v637_v53  ;;  %v410_v12 = vmul.f32 %v1110_v59, %v1110_v59 }
 0x11e   :  { %890 = vlog2.f32 %v653_v58  ;;  %v409_v13 = vmul.f32 %v1117_v62, %v1117_v62  ;;  %v497_v24 = vmul.f32 %v1078_v33, %v1078_v33  ;;  %v496_v59 = vmul.f32 %v1073_v30, %v1073_v30 }
 0x11f   :  { %892 = vlog2.f32 %v654_v20  ;;  %v879_v14 = vpop.eup %878  ;;  %v412_v30 = vmul.f32 %v1124_v1, %v1124_v1  ;;  %v411_v43 = vmul.f32 %v1120_v63, %v1120_v63  ;;  %v499_v63 = vmul.f32 %v1107_v57, %v1107_v57 }
 0x120   :  { %518 = vrot.lane.b32.xlu1 %v495_v32, %s1001_s19  ;;  %516 = vrot.lane.b32.xlu0 %v494_v49, %s1001_s19  ;;  %894 = vrcp.f32 %v637_v53  ;;  %v655_v15 = vmul.f32 %v879_v14, %v625_v21  ;;  %v500_v3 = vmul.f32 %v1127_v4, %v1127_v4  ;;  %v501_v0 = vmul.f32 %v1138_v6, %v1138_v6 }
 0x121   :  { %896 = vrcp.f32 %v638_v54 }
 0x122   :  { %v881_v56 = vpop.eup %880  ;;  %898 = vlog2.f32 %v655_v15 }
 0x123   :  { %v674_v16 = vmul.f32 0.6931472, %v881_v56  ;;  %v883_v17 = vpop.eup %882 }
 0x124   :  { %435 = vrot.lane.b32.xlu1 %v410_v12, %s1001_s19  ;;  %433 = vrot.lane.b32.xlu0 %v409_v13, %s1001_s19  ;;  %v885_v62 = vpop.eup %884  ;;  %v656_v28 = vmul.f32 %v883_v17, %v1140_v7 }
 0x125   :  { %v691_v26 = vand.u32 2147483647, %v674_v16  ;;  %v676_v31 = vmul.f32 0.6931472, %v885_v62  ;;  %v413_v16 = vmul.f32 %v1158_v25, %v1158_v25  ;;  %v406_v25 = vmul.f32 %v1177_v42, %v1177_v42 }
 0x126   :  { %v887_v21 = vpop.eup %886  ;;  %900 = vlog2.f32 %v656_v28  ;;  %v405_v28 = vmul.f32 %v1172_v39, %v1172_v39 }
 0x127   :  { %v1236_v32 = vsel %vm1090_vm1, 0.0, %v691_v26  ;;  %v889_v33 = vpop.eup %888  ;;  %v692_v46 = vand.u32 2147483647, %v676_v31  ;;  %v649_v7 = vmul.f32 %v887_v21, %v619_v34 }
 0x128   :  { %522 = vrot.lane.b32.xlu1 %v497_v24, %s1001_s19  ;;  %520 = vrot.lane.b32.xlu0 %v496_v59, %s1001_s19  ;;  %v891_v47 = vpop.eup %890  ;;  %v650_v48 = vmul.f32 %v889_v33, %v620_v40  ;;  %v498_v40 = vmul.f32 %v1101_v52, %v1101_v52  ;;  %v492_v52 = vmul.f32 %v1151_v22, %v1151_v22 }
 0x129   :  { %v893_v49 = vpop.eup %892  ;;  %v702_v41 = vsel %vm1096_vm2, 0.0, %v692_v46  ;;  %v678_v53 = vmul.f32 0.6931472, %v891_v47  ;;  %902 = vlog2.f32 %v649_v7  ;;  %v414_v22 = vmul.f32 %v1165_v36, %v1165_v36 }
 0x12a   :  { %v895_v54 = vpop.eup %894  ;;  %v680_v55 = vmul.f32 0.6931472, %v893_v49  ;;  %904 = vlog2.f32 %v650_v48 }
 0x12b   :  { %v897_v1 = vpop.eup %896  ;;  %v693_v34 = vand.u32 2147483647, %v678_v53  ;;  %v657_v58 = vmul.f32 %v895_v54, %v627_v51 }
 0x12c   :  { %439 = vrot.lane.b32.xlu1 %v412_v30, %s1001_s19  ;;  %437 = vrot.lane.b32.xlu0 %v411_v43, %s1001_s19  ;;  %v694_v20 = vand.u32 2147483647, %v680_v55  ;;  %v658_v12 = vmul.f32 %v897_v1, %v1180_v44  ;;  %v899_v13 = vpop.eup %898  ;;  %v493_v44 = vmul.f32 %v1162_v35, %v1162_v35 }
 0x12d   :  { %v703_v50 = vsel %vm1142_vm4, 0.0, %v693_v34  ;;  %906 = vlog2.f32 %v657_v58  ;;  %v682_v14 = vmul.f32 0.6931472, %v899_v13 }
 0x12e   :  { %v704_v57 = vsel %vm1134_vm3, 0.0, %v694_v20  ;;  %908 = vlog2.f32 %v658_v12 }
 0x12f   :  { %v695_v56 = vand.u32 2147483647, %v682_v14 }
 0x130   :  { %526 = vrot.lane.b32.xlu1 %v499_v63, %s1001_s19  ;;  %524 = vrot.lane.b32.xlu0 %v498_v40, %s1001_s19  ;;  %v901_v51 = vpop.eup %900 }
 0x131   :  { %v684_v9 = vmul.f32 0.6931472, %v901_v51  ;;  %v705_v15 = vsel %vm1186_vm5, 0.0, %v695_v56 }
 0x133   :  { %v903_v5 = vpop.eup %902  ;;  %v696_v17 = vand.u32 2147483647, %v684_v9 }
 0x134   :  { %512 = vrot.lane.b32.xlu0 %v492_v52, %s1001_s19  ;;  %514 = vrot.lane.b32.xlu1 %v493_v44, %s1001_s19  ;;  %v905_v24 = vpop.eup %904  ;;  %v670_v35 = vmul.f32 0.6931472, %v903_v5 }
 0x135   :  { %v706_v59 = vsel %vm1191_vm6, 0.0, %v696_v17  ;;  %v672_v62 = vmul.f32 0.6931472, %v905_v24 }
 0x136   :  { %v689_v45 = vand.u32 2147483647, %v670_v35 }
 0x137   :  { %v907_v26 = vpop.eup %906  ;;  %v690_v36 = vand.u32 2147483647, %v672_v62 }
 0x138   :  { %441 = vrot.lane.b32.xlu0 %v413_v16, %s1001_s19  ;;  %443 = vrot.lane.b32.xlu1 %v414_v22, %s1001_s19  ;;  %v909_v31 = vpop.eup %908  ;;  %v699_v21 = vsel %vm1201_vm7, 0.0, %v689_v45  ;;  %v686_v33 = vmul.f32 0.6931472, %v907_v26 }
 0x139   :  { %v700_v23 = vsel %vm1205_vm8, 0.0, %v690_v36  ;;  %v688_v30 = vmul.f32 0.6931472, %v909_v31 }
 0x13a   :  { %v697_v43 = vand.u32 2147483647, %v686_v33 }
 0x13b   :  { %v698_v46 = vand.u32 2147483647, %v688_v30 }
 0x13c   :  { %425 = vrot.lane.b32.xlu0 %v405_v28, %s1001_s19  ;;  %427 = vrot.lane.b32.xlu1 %v406_v25, %s1001_s19  ;;  %v707_v39 = vsel %vm1212_vm9, 0.0, %v697_v43 }
 0x13d   :  { %v708_v42 = vsel %vm1217_vm10, 0.0, %v698_v46 }
 0x140   :  { %723 = vrot.lane.b32.xlu0 %v1236_v32, %s1001_s19  ;;  %725 = vrot.lane.b32.xlu1 %v702_v41, %s1001_s19 }
 0x144   :  { %727 = vrot.lane.b32.xlu0 %v703_v50, %s1001_s19  ;;  %729 = vrot.lane.b32.xlu1 %v704_v57, %s1001_s19 }
 0x148   :  { %731 = vrot.lane.b32.xlu0 %v705_v15, %s1001_s19  ;;  %733 = vrot.lane.b32.xlu1 %v706_v59, %s1001_s19 }
 0x14c   :  { %719 = vrot.lane.b32.xlu0 %v699_v21, %s1001_s19  ;;  %721 = vrot.lane.b32.xlu1 %v700_v23, %s1001_s19 }
 0x150   :  { %528 = vrot.lane.b32.xlu0 %v500_v3, %s1001_s19  ;;  %530 = vrot.lane.b32.xlu1 %v501_v0, %s1001_s19 }
 0x154   :  { %735 = vrot.lane.b32.xlu0 %v707_v39, %s1001_s19  ;;  %737 = vrot.lane.b32.xlu1 %v708_v42, %s1001_s19  ;;  %s972_s19 = scalar_lea.vmem %s800_s18, 16 }
 0x155   :  { %p973_p8 = scmp.ne.s32.totalorder %s800_s18, %s972_s19  ;;  %p978_p10 = scmp.lt.s32.totalorder %s976_s20, %s972_s19 }
 0x157   :  { %p979_p11 = por %p978_p10, %p977_p9 }
 0x159   :  { %p980_p12 = pnand %p979_p11, %p973_p8 }
 0x17a   :  { %v304_v8 = vpop.permute.xlu0 %303  ;;  %v227_v2 = vpop.permute.xlu1 %226 }
 0x17b   :  { %v317_v32 = vadd.f32 %v304_v8, %v1055_v18 }
 0x17d   :  { %910 = vrsqrt.f32 %v317_v32  ;;  %vm330_vm11 = vcmp.eq.f32.partialorder %v317_v32, inf  ;;  %vm332_vm12 = vcmp.eq.f32.partialorder %v317_v32, 0.0 }
 0x17e   :  { %v306_v7 = vpop.permute.xlu1 %305  ;;  %v229_v47 = vpop.permute.xlu0 %228 }
 0x17f   :  { %v318_v4 = vadd.f32 %v306_v7, %v1071_v29  ;;  %v1311_v54 = vadd.f32 %v229_v47, %v1069_v27 }
 0x181   :  { %912 = vrsqrt.f32 %v318_v4  ;;  %vm337_vm13 = vcmp.eq.f32.partialorder %v318_v4, inf  ;;  %v340_v14 = vand.u32 2147483648, %v318_v4  ;;  %vm339_vm14 = vcmp.eq.f32.partialorder %v318_v4, 0.0 }
 0x182   :  { %v1306_v48 = vpop.permute.xlu0 %429  ;;  %v1308_v6 = vpop.permute.xlu1 %431  ;;  %vm255_vm4 = vcmp.eq.f32.partialorder %v1311_v54, inf  ;;  %vm257_vm5 = vcmp.eq.f32.partialorder %v1311_v54, 0.0  ;;  %v258_v39 = vand.u32 2147483648, %v1311_v54 }
 0x186   :  { %v310_v49 = vpop.permute.xlu0 %309  ;;  %v308_v41 = vpop.permute.xlu1 %307 }
 0x187   :  { %v911_v53 = vpop.eup %910  ;;  %v320_v55 = vadd.f32 %v310_v49, %v1114_v61  ;;  %v319_v18 = vadd.f32 %v308_v41, %v1112_v60  ;;  %v333_v60 = vand.u32 2147483648, %v317_v32 }
 0x188   :  { %v329_v1 = vmul.f32 %v911_v53, %v317_v32 }
 0x189   :  { %914 = vrsqrt.f32 %v320_v55  ;;  %vm351_vm15 = vcmp.eq.f32.partialorder %v320_v55, inf  ;;  %v354_v5 = vand.u32 2147483648, %v320_v55  ;;  %vm344_vm1 = vcmp.eq.f32.partialorder %v319_v18, inf }
 0x18a   :  { %916 = vrsqrt.f32 %v319_v18  ;;  %v231_v63 = vpop.permute.xlu1 %230  ;;  %v233_v29 = vpop.permute.xlu0 %232  ;;  %v331_v61 = vsel %vm330_vm11, %v317_v32, %v329_v1  ;;  %v347_v24 = vand.u32 2147483648, %v319_v18  ;;  %vm353_vm2 = vcmp.eq.f32.partialorder %v320_v55, 0.0 }
 0x18b   :  { %v913_v40 = vpop.eup %912  ;;  %918 = vrsqrt.f32 %v1311_v54  ;;  %v1317_v34 = vadd.f32 %v231_v63, %v1146_v10  ;;  %v1320_v58 = vadd.f32 %v233_v29, %v1148_v11  ;;  %v1331_v11 = vadd.f32 %v227_v2, %v1059_v19 }
 0x18c   :  { %v336_v27 = vmul.f32 %v913_v40, %v318_v4  ;;  %v1333_v50 = vsel %vm332_vm12, %v333_v60, %v331_v61  ;;  %vm346_vm3 = vcmp.eq.f32.partialorder %v319_v18, 0.0 }
 0x18d   :  { %920 = vrsqrt.f32 %v1317_v34  ;;  %v562_v51 = vmax.f32 %v1333_v50, 1e-07  ;;  %vm262_vm6 = vcmp.eq.f32.partialorder %v1317_v34, inf  ;;  %vm264_vm7 = vcmp.eq.f32.partialorder %v1317_v34, 0.0 }
 0x18e   :  { %v235_v20 = vpop.permute.xlu1 %234  ;;  %v302_v12 = vpop.permute.xlu0 %301  ;;  %922 = vrsqrt.f32 %v1320_v58  ;;  %v338_v57 = vsel %vm337_vm13, %v318_v4, %v336_v27  ;;  %v265_v8 = vand.u32 2147483648, %v1317_v34  ;;  %vm269_vm9 = vcmp.eq.f32.partialorder %v1320_v58, inf }
 0x18f   :  { %v1325_v13 = vadd.f32 %v235_v20, %v1167_v37  ;;  %v1328_v10 = vadd.f32 %v302_v12, %v1169_v38  ;;  %v1341_v38 = vsel %vm339_vm14, %v340_v14, %v338_v57  ;;  %v272_v29 = vand.u32 2147483648, %v1320_v58 }
 0x190   :  { %v563_v16 = vmax.f32 %v1341_v38, 1e-07  ;;  %vm271_vm12 = vcmp.eq.f32.partialorder %v1320_v58, 0.0  ;;  %vm248_vm14 = vcmp.eq.f32.partialorder %v1331_v11, inf }
 0x191   :  { %924 = vrsqrt.f32 %v1325_v13  ;;  %vm323_vm8 = vcmp.eq.f32.partialorder %v1328_v10, inf  ;;  %v326_v32 = vand.u32 2147483648, %v1328_v10  ;;  %vm325_vm10 = vcmp.eq.f32.partialorder %v1328_v10, 0.0 }
 0x192   :  { %926 = vrsqrt.f32 %v1328_v10  ;;  %v1337_v52 = vpop.permute.xlu1 %518  ;;  %v1339_v44 = vpop.permute.xlu0 %516  ;;  %vm276_vm11 = vcmp.eq.f32.partialorder %v1325_v13, inf  ;;  %vm278_vm13 = vcmp.eq.f32.partialorder %v1325_v13, 0.0 }
 0x193   :  { %v915_v37 = vpop.eup %914  ;;  %928 = vrsqrt.f32 %v1331_v11 }
 0x194   :  { %v917_v19 = vpop.eup %916  ;;  %v350_v56 = vmul.f32 %v915_v37, %v320_v55  ;;  %930 = vrcp.f32 %v562_v51 }
 0x195   :  { %v919_v9 = vpop.eup %918  ;;  %v343_v15 = vmul.f32 %v917_v19, %v319_v18  ;;  %932 = vrcp.f32 %v563_v16 }
 0x196   :  { %v1346_v22 = vpop.permute.xlu1 %435  ;;  %v1348_v17 = vpop.permute.xlu0 %433  ;;  %v352_v35 = vsel %vm351_vm15, %v320_v55, %v350_v56  ;;  %v254_v26 = vmul.f32 %v919_v9, %v1311_v54  ;;  %vm250_vm15 = vcmp.eq.f32.partialorder %v1331_v11, 0.0 }
 0x197   :  { %v921_v59 = vpop.eup %920  ;;  %v345_v62 = vsel %vm344_vm1, %v319_v18, %v343_v15  ;;  %v1350_v45 = vsel %vm353_vm2, %v354_v5, %v352_v35  ;;  %vm386_vm1 = vcmask 261120  }
 0x198   :  { %v261_v28 = vmul.f32 %v921_v59, %v1317_v34  ;;  %v1356_v25 = vsel %vm346_vm3, %v347_v24, %v345_v62  ;;  %v923_v36 = vpop.eup %922  ;;  %v565_v21 = vmax.f32 %v1350_v45, 1e-07  ;;  %v256_v46 = vsel %vm255_vm4, %v1311_v54, %v254_v26 }
 0x199   :  { %v564_v31 = vmax.f32 %v1356_v25, 1e-07  ;;  %v268_v3 = vmul.f32 %v923_v36, %v1320_v58  ;;  %v1390_v49 = vsel %vm257_vm5, %v258_v39, %v256_v46  ;;  %v446_v39 = vsel %vm117_vm0, %v1306_v48, %v1308_v6 }
 0x19a   :  { %v1362_v33 = vpop.permute.xlu1 %522  ;;  %v1364_v23 = vpop.permute.xlu0 %520  ;;  %v263_v42 = vsel %vm262_vm6, %v1317_v34, %v261_v28  ;;  %v557_v61 = vmax.f32 %v1390_v49, 1e-07 }
 0x19b   :  { %v925_v30 = vpop.eup %924  ;;  %934 = vrcp.f32 %v564_v31  ;;  %v1392_v41 = vsel %vm264_vm7, %v265_v8, %v263_v42  ;;  %v270_v55 = vsel %vm269_vm9, %v1320_v58, %v268_v3 }
 0x19c   :  { %v927_v43 = vpop.eup %926  ;;  %936 = vrcp.f32 %v565_v21  ;;  %v275_v4 = vmul.f32 %v925_v30, %v1325_v13  ;;  %v558_v60 = vmax.f32 %v1392_v41, 1e-07  ;;  %v1411_v12 = vsel %vm271_vm12, %v272_v29, %v270_v55 }
 0x19d   :  { %v322_v0 = vmul.f32 %v927_v43, %v1328_v10  ;;  %v929_v2 = vpop.eup %928  ;;  %v559_v9 = vmax.f32 %v1411_v12, 1e-07  ;;  %vm1475_vm2 = vcmp.eq.f32.partialorder %v557_v61, %v562_v51 }
 0x19e   :  { %v1382_v7 = vpop.permute.xlu1 %439  ;;  %v1384_v47 = vpop.permute.xlu0 %437  ;;  %v247_v63 = vmul.f32 %v929_v2, %v1331_v11  ;;  %v277_v27 = vsel %vm276_vm11, %v1325_v13, %v275_v4  ;;  %vm1500_vm3 = vcmp.eq.f32.partialorder %v558_v60, %v563_v16 }
 0x19f   :  { %v324_v53 = vsel %vm323_vm8, %v1328_v10, %v322_v0  ;;  %v931_v1 = vpop.eup %930  ;;  %v279_v10 = vand.u32 2147483648, %v1325_v13  ;;  %v251_v13 = vand.u32 2147483648, %v1331_v11  ;;  %v447_v0 = vsel %vm117_vm0, %v1348_v17, %v1346_v22 }
 0x1a0   :  { %v1397_v18 = vsel %vm325_vm10, %v326_v32, %v324_v53  ;;  %v933_v20 = vpop.eup %932  ;;  %v572_v57 = vmul.f32 %v931_v1, %v557_v61  ;;  %v249_v56 = vsel %vm248_vm14, %v1331_v11, %v247_v63  ;;  %v367_v53 = vsub.f32 %v1333_v50, %v1390_v49 }
 0x1a1   :  { %v561_v54 = vmax.f32 %v1397_v18, 1e-07  ;;  %v1420_v14 = vsel %vm278_vm13, %v279_v10, %v277_v27  ;;  %v573_v15 = vmul.f32 %v933_v20, %v558_v60  ;;  %v1431_v59 = vsel %vm250_vm15, %v251_v13, %v249_v56 }
 0x1a2   :  { %v1403_v40 = vpop.permute.xlu1 %526  ;;  %v1405_v34 = vpop.permute.xlu0 %524  ;;  %v560_v24 = vmax.f32 %v1420_v14, 1e-07  ;;  %v556_v36 = vmax.f32 %v1431_v59, 1e-07  ;;  %v448_v48 = vsel %vm117_vm0, %v1384_v47, %v1382_v7  ;;  %v470_v1 = vmul.f32 %v1333_v50, %v1333_v50 }
 0x1a3   :  { %938 = vrcp.f32 %v561_v54  ;;  %v471_v22 = vmul.f32 %v1341_v38, %v1341_v38  ;;  %v469_v29 = vmul.f32 %v1397_v18, %v1397_v18  ;;  %v366_v27 = vsub.f32 %v1397_v18, %v1431_v59 }
 0x1a4   :  { %940 = vlog2.f32 %v572_v57  ;;  %v382_v57 = vmul.f32 %v367_v53, %v367_v53  ;;  %v473_v49 = vmul.f32 %v1350_v45, %v1350_v45  ;;  %v368_v61 = vsub.f32 %v1341_v38, %v1392_v41 }
 0x1a5   :  { %v935_v58 = vpop.eup %934  ;;  %942 = vlog2.f32 %v573_v15  ;;  %vm576_vm4 = vcmp.eq.f32.partialorder %v556_v36, %v561_v54  ;;  %vm579_vm5 = vcmp.eq.f32.partialorder %v559_v9, %v564_v31  ;;  %vm580_vm6 = vcmp.eq.f32.partialorder %v560_v24, %v565_v21 }
 0x1a6   :  { %v513_v37 = vpop.permute.xlu0 %512  ;;  %v515_v19 = vpop.permute.xlu1 %514  ;;  %v574_v35 = vmul.f32 %v935_v58, %v559_v9  ;;  %v533_v58 = vsel %vm117_vm0, %v1339_v44, %v1337_v52  ;;  %v477_v52 = vsel %vm386_vm1, %v471_v22, 0.0  ;;  %v383_v16 = vmul.f32 %v368_v61, %v368_v61 }
 0x1a7   :  { %v937_v5 = vpop.eup %936  ;;  %v532_v56 = vsel %vm117_vm0, %v513_v37, %v515_v19  ;;  %v474_v19 = vsel %vm386_vm1, %v469_v29, 0.0  ;;  %v370_v22 = vsub.f32 %v1350_v45, %v1420_v14 }
 0x1a8   :  { %v575_v28 = vmul.f32 %v937_v5, %v560_v24  ;;  %944 = vlog2.f32 %v574_v35  ;;  %v472_v35 = vmul.f32 %v1356_v25, %v1356_v25  ;;  %v542_v50 = vadd.f32 %v533_v58, %v532_v56 }
 0x1aa   :  { %v442_v62 = vpop.permute.xlu0 %441  ;;  %v444_v26 = vpop.permute.xlu1 %443  ;;  %946 = vlog2.f32 %v575_v28 }
 0x1ab   :  { %v449_v17 = vsel %vm117_vm0, %v442_v62, %v444_v26  ;;  %v475_v62 = vsel %vm386_vm1, %v470_v1, 0.0  ;;  %v381_v26 = vmul.f32 %v366_v27, %v366_v27 }
 0x1ad   :  { %v939_v30 = vpop.eup %938 }
 0x1ae   :  { %v426_v43 = vpop.permute.xlu0 %425  ;;  %v428_v11 = vpop.permute.xlu1 %427  ;;  %v571_v46 = vmul.f32 %v939_v30, %v556_v36 }
 0x1af   :  { %v445_v42 = vsel %vm117_vm0, %v426_v43, %v428_v11  ;;  %v941_v8 = vpop.eup %940  ;;  %v388_v43 = vsel %vm386_vm1, %v382_v57, 0.0  ;;  %v534_v11 = vsel %vm117_vm0, %v1364_v23, %v1362_v33  ;;  %v387_v23 = vsel %vm386_vm1, %v381_v26, 0.0 }
 0x1b0   :  { %v455_v3 = vadd.f32 %v446_v39, %v445_v42  ;;  %948 = vlog2.f32 %v571_v46  ;;  %v943_v6 = vpop.eup %942  ;;  %v584_v63 = vmul.f32 0.6931472, %v941_v8  ;;  %v479_v8 = vsel %vm386_vm1, %v472_v35, 0.0 }
 0x1b1   :  { %v586_v15 = vmul.f32 0.6931472, %v943_v6  ;;  %v543_v38 = vadd.f32 %v542_v50, %v534_v11  ;;  %v389_v54 = vadd.f32 %v388_v43, %v387_v23  ;;  %v481_v35 = vsel %vm386_vm1, %v473_v49, 0.0 }
 0x1b2   :  { %v456_v2 = vadd.f32 %v455_v3, %v447_v0  ;;  %v1445_v32 = vpop.permute.xlu0 %723  ;;  %v1447_v4 = vpop.permute.xlu1 %725  ;;  %v592_v37 = vand.u32 2147483647, %v584_v63  ;;  %v476_v0 = vadd.f32 %v475_v62, %v474_v19  ;;  %v385_v62 = vmul.f32 %v370_v22, %v370_v22 }
 0x1b3   :  { %v945_v20 = vpop.eup %944  ;;  %v593_v42 = vand.u32 2147483647, %v586_v15  ;;  %v740_v58 = vsel %vm117_vm0, %v1445_v32, %v1447_v4 }
 0x1b4   :  { %v457_v55 = vadd.f32 %v456_v2, %v448_v48  ;;  %v947_v5 = vpop.eup %946  ;;  %v588_v44 = vmul.f32 0.6931472, %v945_v20  ;;  %v369_v2 = vsub.f32 %v1356_v25, %v1411_v12  ;;  %v597_v33 = vsel %vm1475_vm2, 0.0, %v592_v37 }
 0x1b5   :  { %v590_v39 = vmul.f32 0.6931472, %v947_v5  ;;  %v598_v1 = vsel %vm1500_vm3, 0.0, %v593_v42  ;;  %v602_v18 = vsel %vm386_vm1, %v597_v33, 0.0  ;;  %v478_v59 = vadd.f32 %v477_v52, %v476_v0 }
 0x1b6   :  { %v1463_v7 = vpop.permute.xlu0 %727  ;;  %v1465_v47 = vpop.permute.xlu1 %729  ;;  %v458_v10 = vadd.f32 %v457_v55, %v449_v17  ;;  %v594_v48 = vand.u32 2147483647, %v588_v44  ;;  %v535_v25 = vsel %vm117_vm0, %v1405_v34, %v1403_v40  ;;  %v604_v29 = vsel %vm386_vm1, %v598_v1, 0.0 }
 0x1b7   :  { %v595_v60 = vand.u32 2147483647, %v590_v39  ;;  %v544_v63 = vadd.f32 %v543_v38, %v535_v25  ;;  %v384_v27 = vmul.f32 %v369_v2, %v369_v2  ;;  %v390_v20 = vsel %vm386_vm1, %v383_v16, 0.0 }
 0x1b8   :  { %459 = vadd.xlane.f32.xlu1 %v458_v10  ;;  %v599_v31 = vsel %vm579_vm5, 0.0, %v594_v48  ;;  %v480_v21 = vadd.f32 %v479_v8, %v478_v59  ;;  %v391_v24 = vadd.f32 %v390_v20, %v389_v54  ;;  %v741_v19 = vsel %vm117_vm0, %v1463_v7, %v1465_v47 }
 0x1b9   :  { %v600_v40 = vsel %vm580_vm6, 0.0, %v595_v60  ;;  %v606_v14 = vsel %vm386_vm1, %v599_v31, 0.0  ;;  %v392_v52 = vsel %vm386_vm1, %v384_v27, 0.0 }
 0x1ba   :  { %v949_v28 = vpop.eup %948  ;;  %v1484_v30 = vpop.permute.xlu0 %731  ;;  %v608_v5 = vsel %vm386_vm1, %v600_v40, 0.0  ;;  %v482_v44 = vadd.f32 %v481_v35, %v480_v21  ;;  %v393_v37 = vadd.f32 %v392_v52, %v391_v24  ;;  %v778_v21 = vlaneseq }
 0x1bb   :  { %v1486_v51 = vpop.permute.xlu1 %733  ;;  %v582_v46 = vmul.f32 0.6931472, %v949_v28  ;;  %v394_v28 = vsel %vm386_vm1, %v385_v62, 0.0 }
 0x1bc   :  { %v395_v50 = vadd.f32 %v394_v28, %v393_v37  ;;  %v742_v49 = vsel %vm117_vm0, %v1484_v30, %v1486_v51  ;;  %v779_v24 = vand.u32 127, %v778_v21 }
 0x1bd   :  { %v591_v53 = vand.u32 2147483647, %v582_v46 }
 0x1be   :  { %v720_v6 = vpop.permute.xlu0 %719  ;;  %vm782_vm7 = vcmp.eq.s32.totalorder %v779_v24, 1  ;;  %vm780_vm8 = vcmp.eq.s32.totalorder %v779_v24, 0 }
 0x1bf   :  { %v722_v41 = vpop.permute.xlu1 %721  ;;  %v596_v55 = vsel %vm576_vm4, 0.0, %v591_v53 }
 0x1c0   :  { %v601_v17 = vsel %vm386_vm1, %v596_v55, 0.0  ;;  %v739_v10 = vsel %vm117_vm0, %v720_v6, %v722_v41 }
 0x1c1   :  { %v603_v12 = vadd.f32 %v602_v18, %v601_v17  ;;  %v749_v15 = vadd.f32 %v740_v58, %v739_v10 }
 0x1c2   :  { %v529_v9 = vpop.permute.xlu0 %528 }
 0x1c3   :  { %v531_v36 = vpop.permute.xlu1 %530  ;;  %v605_v34 = vadd.f32 %v604_v29, %v603_v12  ;;  %v750_v26 = vadd.f32 %v749_v15, %v741_v19 }
 0x1c4   :  { %v536_v57 = vsel %vm117_vm0, %v529_v9, %v531_v36 }
 0x1c5   :  { %v545_v45 = vadd.f32 %v544_v63, %v536_v57  ;;  %v607_v56 = vadd.f32 %v606_v14, %v605_v34  ;;  %v751_v43 = vadd.f32 %v750_v26, %v742_v49 }
 0x1c6   :  { %v736_v32 = vpop.permute.xlu0 %735 }
 0x1c7   :  { %546 = vadd.xlane.f32.xlu0 %v545_v45  ;;  %v609_v13 = vadd.f32 %v608_v5, %v607_v56  ;;  %v738_v4 = vpop.permute.xlu1 %737 }
 0x1c8   :  { %v743_v61 = vsel %vm117_vm0, %v736_v32, %v738_v4  ;;  %vm784_vm0 = vcmp.eq.s32.totalorder %v779_v24, 2 }
 0x1c9   :  { %610 = vadd.xlane.f32.xlu1 %v609_v13  ;;  %v752_v11 = vadd.f32 %v751_v43, %v743_v61 }
 0x1cb   :  { %483 = vadd.xlane.f32.xlu0 %v482_v44 }
 0x1cf   :  { %396 = vadd.xlane.f32.xlu0 %v395_v50 }
 0x1d3   :  { %753 = vadd.xlane.f32.xlu0 %v752_v11 }
 0x245   :  { %v460_v46 = vpop.xlane.xlu1 %459 }
 0x246   :  { %v461_v7 = vrot.slane %v460_v46, 4 }
 0x248   :  { %v462_v3 = vadd.f32 %v461_v7, %v460_v46 }
 0x24a   :  { %v463_v23 = vrot.slane %v462_v3, 2 }
 0x24c   :  { %v464_v55 = vadd.f32 %v463_v23, %v462_v3 }
 0x24e   :  { %v465_v31 = vrot.slane %v464_v55, 1 }
 0x250   :  { %v466_v10 = vadd.f32 %v465_v31, %v464_v55 }
 0x254   :  { %v547_v47 = vpop.xlane.xlu0 %546 }
 0x255   :  { %v548_v39 = vrot.slane %v547_v47, 4 }
 0x256   :  { %v611_v42 = vpop.xlane.xlu1 %610 }
 0x257   :  { %v612_v0 = vrot.slane %v611_v42, 4  ;;  %v549_v53 = vadd.f32 %v548_v39, %v547_v47 }
 0x258   :  { %v484_v8 = vpop.xlane.xlu0 %483 }
 0x259   :  { %v485_v2 = vrot.slane %v484_v8, 4  ;;  %v613_v48 = vadd.f32 %v612_v0, %v611_v42  ;;  %v550_v6 = vrot.slane %v549_v53, 2 }
 0x25b   :  { %v486_v33 = vadd.f32 %v485_v2, %v484_v8  ;;  %v614_v41 = vrot.slane %v613_v48, 2  ;;  %v551_v18 = vadd.f32 %v550_v6, %v549_v53 }
 0x25c   :  { %v397_v30 = vpop.xlane.xlu0 %396 }
 0x25d   :  { %v487_v51 = vrot.slane %v486_v33, 2  ;;  %v398_v38 = vrot.slane %v397_v30, 4  ;;  %v615_v59 = vadd.f32 %v614_v41, %v613_v48  ;;  %v552_v63 = vrot.slane %v551_v18, 1 }
 0x25f   :  { %v399_v16 = vadd.f32 %v398_v38, %v397_v30  ;;  %v488_v17 = vadd.f32 %v487_v51, %v486_v33  ;;  %v616_v20 = vrot.slane %v615_v59, 1  ;;  %v553_v34 = vadd.f32 %v552_v63, %v551_v18 }
 0x260   :  { %v754_v60 = vpop.xlane.xlu0 %753 }
 0x261   :  { %v400_v1 = vrot.slane %v399_v16, 2  ;;  %v755_v22 = vrot.slane %v754_v60, 4  ;;  %v489_v36 = vrot.slane %v488_v17, 1  ;;  %v617_v45 = vadd.f32 %v616_v20, %v615_v59 }
 0x263   :  { %v756_v54 = vadd.f32 %v755_v22, %v754_v60  ;;  %v401_v25 = vadd.f32 %v400_v1, %v399_v16  ;;  %v490_v57 = vadd.f32 %v489_v36, %v488_v17 }
 0x265   :  { %v757_v12 = vrot.slane %v756_v54, 2  ;;  %v402_v9 = vrot.slane %v401_v25, 1 }
 0x267   :  { %v758_v29 = vadd.f32 %v757_v12, %v756_v54  ;;  %v403_v27 = vadd.f32 %v402_v9, %v401_v25 }
 0x269   :  { %839 = vpush %v403_v27  ;;  %v759_v40 = vrot.slane %v758_v29, 1 }
 0x26a   :  { %841 = vpush %v466_v10 }
 0x26b   :  { %843 = vpush %v490_v57  ;;  %v760_v14 = vadd.f32 %v759_v40, %v758_v29 }
 0x26c   :  { %845 = vpush %v553_v34 }
 0x26d   :  { %847 = vpush %v617_v45 }
 0x26e   :  { %849 = vpush %v760_v14 }
 0x29a   :  { %s840_s8 = spop %839 }
 0x29b   :  { %s842_s9 = spop %841 }
 0x29c   :  { %s844_s10 = spop %843  ;;  %s468_s12 = sadd.f32 %s842_s9, %s840_s8 }
 0x29d   :  { %s846_s11 = spop %845 }
 0x29e   :  { %s848_s13 = spop %847  ;;  %s555_s14 = sadd.f32 %s846_s11, %s844_s10  ;;  %v790_v5 = vstv %s468_s12 }
 0x29f   :  { %s850_s15 = spop %849 }
 0x2a0   :  { %s762_s16 = sadd.f32 %s850_s15, %s848_s13  ;;  %v788_v56 = vstv %s555_s14 }
 0x2a2   :  { %v786_v58 = vstv %s762_s16 }
 0x2a3   :  { %v787_v15 = vsel %vm784_vm0, %v786_v58, 0.0 }
 0x2a4   :  { %v789_v13 = vsel %vm782_vm7, %v788_v56, %v787_v15 }
 0x2a5   :  { %v791_v35 = vsel %vm780_vm8, %v790_v5, %v789_v13 }
 0x2a6   :  { %792 = vst [vmem:[#allocation8] sm:$0x1] %v791_v35 }
 0x2a7   :  { %983 = shalt.err (!%p980_p12)
}
 0x2a8   :  { %s984_s23 = scalar_lea.hbm %s1564_s2, 16 }
 0x2a9   :  { %p985_p13 = scmp.ne.s32.totalorder %s1564_s2, %s984_s23  ;;  %p988_p0 = scmp.lt.u32.totalorder %s984_s23, %s1564_s2 }
 0x2ab   :  { %p990_p1 = pnand %p988_p0, %p985_p13 }
 0x2ad   :  { %993 = shalt.err (!%p990_p1)
}
 0x2ae   :  { %802 = dma.vmem_to_hbm [thread:$0]  %s800_s18, 16, %s1564_s2, [#allocation7]  }
 0x2af   :  { %998 = dma.done.wait [#allocation7], 16  }
 0x2b0   :  { %999 = vsyncadd [#allocation7], 4294967280 }
 0x2b1   :  { %806 = vsyncpa [#allocation6], 1 }
 0x2b2   :  { %807 = vsyncpa [#allocation7], 1 }
 0x2b3   :  { %808 = vsyncmov [#allocation3] }
 0x2b6   :  { %s809_s30 = vpop.sfrf %808 }
 0x2b7   :  { %p830_p2 = scmp.ne.s32.totalorder %s809_s30, 0 }
 0x2b9   :  { %813 = shalt.err (%p830_p2)  }

</bundles_post_ra>
